<compile_context>
chip_gen: v5e
topology: v5e:2x2
jax: 0.10.0
libtpu: 0.0.40
codegen_flags: <defaults>
</compile_context>

<pallas_src>
import functools

import jax
import jax.numpy as jnp
from jax.experimental import pallas as pl
from jax.experimental.pallas import tpu as pltpu


def _spike_kernel(x_ref, r_ref, o_ref):
    """x_ref: (C, TP) input rates; r_ref: (S, TP) uniforms; o_ref: (S, TP) int8."""
    C = x_ref.shape[0]

    r = r_ref[...].astype(jnp.float32)                       # (S, TP)

    # Pass 1: per-pixel total over channels, streamed from the ref
    # (only one live (1, TP) value -> no vreg blowup at large TP).
    total = x_ref[0:1, :].astype(jnp.float32)                # (1, TP)
    for c in range(1, C):
        total = total + x_ref[c:c + 1, :].astype(jnp.float32)

    # spikes = #{c < C-1 : r*total >= cumsum_c}.  The last channel can never
    # increment (r < 1 <= cdf_last), so counts stay in [0, C-1] by construction,
    # and the normalization divide is avoided entirely.
    rt = r * total                                           # (S, TP)
    if C == 1:
        counts = jnp.zeros(rt.shape, dtype=jnp.int32)
    else:
        acc = x_ref[0:1, :].astype(jnp.float32)
        counts = (rt >= acc).astype(jnp.int32)
        for c in range(1, C - 1):
            acc = acc + x_ref[c:c + 1, :].astype(jnp.float32)
            counts = counts + (rt >= acc).astype(jnp.int32)

    o_ref[...] = counts.astype(o_ref.dtype)


def _choose_tile(P, tile_pixels, min_tiles):
    """Pick a lane-dense pixel tile (multiple of 128) and padded pixel count."""
    p128 = -(-P // 128) * 128
    cap = max(128, (min(int(tile_pixels), p128) // 128) * 128)
    # Keep >= min_tiles grid steps along the pixel axis (v7x: feed both TCs).
    if min_tiles > 1 and p128 >= 128 * min_tiles:
        cap = min(cap, max(128, (p128 // min_tiles // 128) * 128))
    # Prefer a tile that divides P exactly -> no host-side padding copy.
    if P % 128 == 0:
        for cand in range(cap, 127, -128):
            if P % cand == 0:
                return cand, P
    tp = cap
    return tp, -(-P // tp) * tp


@functools.partial(jax.jit, static_argnames=("tile_pixels",))
def spike_sample(x, rand, *, tile_pixels=8192):
    """x: (B, C, H, W) float; rand: (B, S, H, W) uniform [0,1).

    Returns (B, S, H, W) int8 spike channel indices in [0, C-1].
    """
    B, C, H, W = x.shape
    S = rand.shape[1]
    assert rand.shape == (B, S, H, W)
    assert C <= 127, "int8 output assumes fewer than 128 channels"

    P = H * W
    min_tiles = 2 if B == 1 else 1
    tp, p_pad = _choose_tile(P, tile_pixels, min_tiles)

    # Keep x in its native dtype (bf16 upstream halves the dominant HBM stream);
    # the kernel casts to f32 internally.
    x2 = x.reshape(B, C, P)
    r2 = rand.reshape(B, S, P)
    if p_pad != P:
        # Only hit when H*W is not a multiple of 128; padded pixels are sliced
        # off after the call, 1.0 keeps the math NaN-free.
        x2 = jnp.pad(x2, ((0, 0), (0, 0), (0, p_pad - P)), constant_values=1.0)
        r2 = jnp.pad(r2, ((0, 0), (0, 0), (0, p_pad - P)))

    out = pl.pallas_call(
        _spike_kernel,
        out_shape=jax.ShapeDtypeStruct((B, S, p_pad), jnp.int8),
        grid=(B, p_pad // tp),
        in_specs=[
            pl.BlockSpec((None, C, tp), lambda b, pt: (b, 0, pt)),
            pl.BlockSpec((None, S, tp), lambda b, pt: (b, 0, pt)),
        ],
        out_specs=pl.BlockSpec((None, S, tp), lambda b, pt: (b, 0, pt)),
        compiler_params=pltpu.CompilerParams(
            dimension_semantics=("parallel", "parallel"),
            # Comfortably below v7x's 64 MiB physical VMEM per TC; the
            # double-buffered footprint at tp=8192, C=4, S=8 is ~1 MiB.
            vmem_limit_bytes=32 * 1024 * 1024),
    )(x2, r2)

    if p_pad != P:
        out = out[:, :, :P]
    return out.reshape(B, S, H, W)


def spike_layer_forward(x, number_of_spikes, key, *, tile_pixels=8192):
    """SpikeLayer.forward: draw `number_of_spikes` categorical samples per pixel."""
    B, C, H, W = x.shape
    S = int(number_of_spikes)
    assert S > 0
    rand = jax.random.uniform(key, (B, S, H, W), dtype=jnp.float32)
    return spike_sample(x, rand, tile_pixels=tile_pixels)


def _reference_spikes(x, rand):
    """Pure-JAX reference of the same sampling rule (mirrors kernel math)."""
    B, C, H, W = x.shape
    S = rand.shape[1]
    x2 = x.reshape(B, C, -1).astype(jnp.float32)
    r2 = rand.reshape(B, S, -1).astype(jnp.float32)
    cs = jnp.cumsum(x2, axis=1)                               # (B, C, P)
    rt = r2 * cs[:, -1:, :]                                   # (B, S, P)
    counts = jnp.sum(rt[:, :, None, :] >= cs[:, None, :C - 1, :], axis=2)
    return counts.astype(jnp.int32).reshape(B, S, H, W)


if __name__ == "__main__":
    key = jax.random.PRNGKey(0)
    kx, kr = jax.random.split(key)

    B, C, H, W = 2, 4, 16, 16
    number_of_spikes = 8

    # Positive "firing rate" style input (as the CDF normalization assumes).
    x = jax.random.uniform(kx, (B, C, H, W), dtype=jnp.float32) + 0.1

    # Production path.
    spikes = spike_layer_forward(x, number_of_spikes=number_of_spikes, key=kr)
    spikes = jax.block_until_ready(spikes)
    assert spikes.shape == (B, number_of_spikes, H, W)
    assert spikes.dtype == jnp.int8
    assert int(jnp.min(spikes)) >= 0
    assert int(jnp.max(spikes)) < C

    # Exact cross-check against the pure-JAX reference with identical uniforms.
    rand = jax.random.uniform(kr, (B, number_of_spikes, H, W), dtype=jnp.float32)
    spikes_chk = jax.block_until_ready(spike_sample(x, rand))
    ref = _reference_spikes(x, rand)
    assert bool(jnp.all(spikes_chk.astype(jnp.int32) == ref))
    assert bool(jnp.all(spikes_chk == spikes))  # same key -> same draw

    print("KERNEL_OK")
</pallas_src>

<mosaic_0001>
module attributes {stable_mosaic.version = 11 : i64} {
  func.func @_spike_kernel(%arg0: i32, %arg1: i32, %arg2: memref<1x4x256xf32, #tpu.memory_space<vmem>>, %arg3: memref<1x8x256xf32, #tpu.memory_space<vmem>>, %arg4: memref<1x8x256xi8, #tpu.memory_space<vmem>>) attributes {dimension_semantics = [#tpu.dimension_semantics<parallel>, #tpu.dimension_semantics<parallel>], iteration_bounds = array<i64: 2, 1>, scalar_prefetch = 0 : i64, scratch_operands = 0 : i64, tpu.core_type = #tpu.core_type<tc>, window_params = [{transform_indices = @transform_0, window_bounds = array<i64: 1, 4, 256>}, {transform_indices = @transform_1, window_bounds = array<i64: 1, 8, 256>}, {transform_indices = @transform_2, window_bounds = array<i64: 1, 8, 256>}]} {
    %c0 = arith.constant 0 : index
    %c0_0 = arith.constant 0 : index
    %c0_1 = arith.constant 0 : index
    %0 = vector.load %arg3[%c0, %c0_0, %c0_1] : memref<1x8x256xf32, #tpu.memory_space<vmem>>, vector<1x8x256xf32>
    %1 = vector.shape_cast %0 : vector<1x8x256xf32> to vector<8x256xf32>
    %c0_2 = arith.constant 0 : index
    %c0_3 = arith.constant 0 : index
    %c0_4 = arith.constant 0 : index
    %2 = vector.load %arg2[%c0_2, %c0_3, %c0_4] : memref<1x4x256xf32, #tpu.memory_space<vmem>>, vector<1x1x256xf32>
    %3 = vector.shape_cast %2 : vector<1x1x256xf32> to vector<1x256xf32>
    %c0_5 = arith.constant 0 : index
    %c1 = arith.constant 1 : index
    %c0_6 = arith.constant 0 : index
    %4 = vector.load %arg2[%c0_5, %c1, %c0_6] : memref<1x4x256xf32, #tpu.memory_space<vmem>>, vector<1x1x256xf32>
    %5 = vector.shape_cast %4 : vector<1x1x256xf32> to vector<1x256xf32>
    %6 = arith.addf %3, %5 : vector<1x256xf32>
    %c0_7 = arith.constant 0 : index
    %c2 = arith.constant 2 : index
    %c0_8 = arith.constant 0 : index
    %7 = vector.load %arg2[%c0_7, %c2, %c0_8] : memref<1x4x256xf32, #tpu.memory_space<vmem>>, vector<1x1x256xf32>
    %8 = vector.shape_cast %7 : vector<1x1x256xf32> to vector<1x256xf32>
    %9 = arith.addf %6, %8 : vector<1x256xf32>
    %c0_9 = arith.constant 0 : index
    %c3 = arith.constant 3 : index
    %c0_10 = arith.constant 0 : index
    %10 = vector.load %arg2[%c0_9, %c3, %c0_10] : memref<1x4x256xf32, #tpu.memory_space<vmem>>, vector<1x1x256xf32>
    %11 = vector.shape_cast %10 : vector<1x1x256xf32> to vector<1x256xf32>
    %12 = arith.addf %9, %11 : vector<1x256xf32>
    %13 = vector.broadcast %12 : vector<1x256xf32> to vector<8x256xf32>
    %14 = arith.mulf %1, %13 : vector<8x256xf32>
    %c0_11 = arith.constant 0 : index
    %c0_12 = arith.constant 0 : index
    %c0_13 = arith.constant 0 : index
    %15 = vector.load %arg2[%c0_11, %c0_12, %c0_13] : memref<1x4x256xf32, #tpu.memory_space<vmem>>, vector<1x1x256xf32>
    %16 = vector.shape_cast %15 : vector<1x1x256xf32> to vector<1x256xf32>
    %17 = vector.broadcast %16 : vector<1x256xf32> to vector<8x256xf32>
    %18 = arith.cmpf oge, %14, %17 : vector<8x256xf32>
    %19 = arith.extui %18 : vector<8x256xi1> to vector<8x256xi32>
    %c0_14 = arith.constant 0 : index
    %c1_15 = arith.constant 1 : index
    %c0_16 = arith.constant 0 : index
    %20 = vector.load %arg2[%c0_14, %c1_15, %c0_16] : memref<1x4x256xf32, #tpu.memory_space<vmem>>, vector<1x1x256xf32>
    %21 = vector.shape_cast %20 : vector<1x1x256xf32> to vector<1x256xf32>
    %22 = arith.addf %16, %21 : vector<1x256xf32>
    %23 = vector.broadcast %22 : vector<1x256xf32> to vector<8x256xf32>
    %24 = arith.cmpf oge, %14, %23 : vector<8x256xf32>
    %25 = arith.extui %24 : vector<8x256xi1> to vector<8x256xi32>
    %26 = arith.addi %19, %25 : vector<8x256xi32>
    %c0_17 = arith.constant 0 : index
    %c2_18 = arith.constant 2 : index
    %c0_19 = arith.constant 0 : index
    %27 = vector.load %arg2[%c0_17, %c2_18, %c0_19] : memref<1x4x256xf32, #tpu.memory_space<vmem>>, vector<1x1x256xf32>
    %28 = vector.shape_cast %27 : vector<1x1x256xf32> to vector<1x256xf32>
    %29 = arith.addf %22, %28 : vector<1x256xf32>
    %30 = vector.broadcast %29 : vector<1x256xf32> to vector<8x256xf32>
    %31 = arith.cmpf oge, %14, %30 : vector<8x256xf32>
    %32 = arith.extui %31 : vector<8x256xi1> to vector<8x256xi32>
    %33 = arith.addi %26, %32 : vector<8x256xi32>
    %34 = arith.trunci %33 : vector<8x256xi32> to vector<8x256xi8>
    %c0_20 = arith.constant 0 : index
    %c0_21 = arith.constant 0 : index
    %c0_22 = arith.constant 0 : index
    %35 = vector.load %arg4[%c0_20, %c0_21, %c0_22] : memref<1x8x256xi8, #tpu.memory_space<vmem>>, vector<1x8x256xi8>
    %36 = vector.shape_cast %35 : vector<1x8x256xi8> to vector<8x256xi8>
    %37 = vector.shape_cast %34 : vector<8x256xi8> to vector<1x8x256xi8>
    tpu.vector_store %arg4[%c0_20, %c0_21, %c0_22], %37 {strides = array<i32>} : memref<1x8x256xi8, #tpu.memory_space<vmem>>, vector<1x8x256xi8>,
    return
  }
  func.func @transform_0(%arg0: i32, %arg1: i32) -> (i32, i32, i32) {
    %c0_i32 = arith.constant 0 : i32
    %c0_i32_0 = arith.constant 0 : i32
    return %arg0, %c0_i32, %arg1 : i32, i32, i32
  }
  func.func @transform_1(%arg0: i32, %arg1: i32) -> (i32, i32, i32) {
    %c0_i32 = arith.constant 0 : i32
    %c0_i32_0 = arith.constant 0 : i32
    return %arg0, %c0_i32, %arg1 : i32, i32, i32
  }
  func.func @transform_2(%arg0: i32, %arg1: i32) -> (i32, i32, i32) {
    %c0_i32 = arith.constant 0 : i32
    %c0_i32_0 = arith.constant 0 : i32
    return %arg0, %c0_i32, %arg1 : i32, i32, i32
  }
}

</mosaic_0001>

<bundles_post_ra>
// kernel: spike_sample.1
= control target key start
LH: loop header
LB: loop body
LE: loop exit
PB: predicated region body
PF: predicated region fallthrough
CT: control target
= control target key end

     0   :  { %s461_s9 = smov 0   ;;  %s463_s10 = smov 0   ;;  %s502_s0 = inlined_call_operand.vmem [shape: f32[2,4,256], index: 0, kind: input, shape index: {}]   ;;  %s503_s1 = inlined_call_operand.vmem [shape: f32[2,8,256], index: 1, kind: input, shape index: {}]   ;;  %s504_s2 = inlined_call_operand.vmem [shape: s8[2,8,256], index: 2, kind: output, shape index: {}]  }
   0x1   :  { %s465_s11 = smov 0  }
   0x2 LB: > { %s24_s12 = sadd.s32 1, %s439_s10  ;;  %p381_p0 = scmp.ge.s32.totalorder %s443_s11, 1  ;;  %s443_s11 = sphi %s465_s11, %s12_s11   ;;  %s439_s10 = sphi %s463_s10, %s506_s10   ;;  %s435_s9 = sphi %s461_s9, %s505_s9  }
   0x3   : > { %p26_p1 = scmp.ge.s32.totalorder %s24_s12, 2  ;;  %p150_p2 = scmp.lt.s32.totalorder %s443_s11, 3 }
   0x5   : > { %s508_s12 = smov (%p26_p1, %s24_s12), 0  ;;  %p151_p3 = pnand %p381_p0, %p150_p2 }
   0x6   : > { %p190_p4 = scmp.lt.s32.totalorder (!%p151_p3), %s435_s9, 1 }
   0x7   : > { %154 = sbr.rel (%p151_p3) target bundleno = 37 (0x25), region = 28 }
   0xc   : > { %s510_s9 = smov (!%p190_p4, %s435_s9), 1  ;;  %v445_v19 = vmov 0  }
   0xd   : > { %s393_s13 = sshll.u32 %s510_s9, 3  ;;  %s394_s17 = sshll.u32 %s510_s9, 4 }
   0xe   : > { %s197_s16 = scalar_lea.vmem %s502_s0, %s393_s13  ;;  %s207_s20 = scalar_lea.vmem %s503_s1, %s394_s17 }
   0xf   : > { %v221_v0 = vld [vmem:[%s197_s16] ss:$4 sm:$0x3]  ;;  %v388_v1 = vld [vmem:[%s197_s16 + $0x1] ss:$4 sm:$0x3] }
  0x10   : > { %v389_v2 = vld [vmem:[%s197_s16 + $0x2] ss:$4 sm:$0x3]  ;;  %v224_v3 = vadd.f32 %v388_v1, %v221_v0  ;;  %v390_v4 = vld [vmem:[%s197_s16 + $0x3] ss:$4 sm:$0x3] }
  0x11   : > { %v219_v7 = vld [vmem:[%s207_s20] sm:$0xff]  ;;  %v220_v8 = vld [vmem:[%s207_s20 + $0x8] sm:$0xff]  ;;  %v239_v9 = vperm.slane %v221_v0, 0  ;;  %v240_v10 = vperm.slane %v221_v0, 1  ;;  %s395_s21 = sshll.u32 %s510_s9, 2 }
  0x12   : > { %v227_v5 = vadd.f32 %v389_v2, %v224_v3  ;;  %v248_v13 = vperm.slane %v224_v3, 0  ;;  %v249_v14 = vperm.slane %v224_v3, 1  ;;  %s217_s24 = scalar_lea.vmem %s504_s2, %s395_s21 }
  0x14   : > { %v230_v6 = vadd.f32 %v390_v4, %v227_v5  ;;  %v259_v17 = vperm.slane %v227_v5, 0  ;;  %v260_v18 = vperm.slane %v227_v5, 1 }
  0x16   : > { %v232_v11 = vperm.slane %v230_v6, 0  ;;  %v233_v12 = vperm.slane %v230_v6, 1 }
  0x18   : > { %v236_v15 = vmul.f32 %v232_v11, %v219_v7  ;;  %v237_v16 = vmul.f32 %v233_v12, %v220_v8 }
  0x1a   : > { %vm243_vm0 = vcmp.ge.f32.partialorder %v236_v15, %v239_v9  ;;  %vm244_vm1 = vcmp.ge.f32.partialorder %v237_v16, %v240_v10  ;;  %vm252_vm2 = vcmp.ge.f32.partialorder %v236_v15, %v248_v13  ;;  %vm253_vm3 = vcmp.ge.f32.partialorder %v237_v16, %v249_v14 }
  0x1b   : > { %v245_v20 = vsel %vm243_vm0, 1, %v445_v19  ;;  %v246_v21 = vsel %vm244_vm1, 1, %v445_v19  ;;  %v254_v22 = vsel %vm252_vm2, 1, %v445_v19  ;;  %v255_v23 = vsel %vm253_vm3, 1, %v445_v19 }
  0x1c   : > { %v256_v24 = vadd.s32 %v254_v22, %v245_v20  ;;  %v257_v25 = vadd.s32 %v255_v23, %v246_v21  ;;  %vm263_vm4 = vcmp.ge.f32.partialorder %v236_v15, %v259_v17  ;;  %vm264_vm5 = vcmp.ge.f32.partialorder %v237_v16, %v260_v18 }
  0x1d   : > { %v265_v26 = vsel %vm263_vm4, 1, %v445_v19  ;;  %v266_v27 = vsel %vm264_vm5, 1, %v445_v19 }
  0x1e   : > { %v267_v28 = vadd.s32 %v265_v26, %v256_v24  ;;  %v268_v29 = vadd.s32 %v266_v27, %v257_v25 }
  0x20   : > { %v269_v30 = vpack.c.b16 %v268_v29, %v267_v28 }
  0x22   : > { %v270_v31 = vpack.c.b8 %v269_v30, %v269_v30 }
  0x24   : > { %271 = vst [vmem:[%s217_s24] sm:$0xf] %v270_v31 }
  0x25 PF: > { %s12_s11 = sadd.s32 1, %s443_s11   ;;  %s505_s9 = smov %s439_s10 }
  0x26   : > { %p9_p5 = scmp.ge.s32.totalorder %s12_s11, 4   ;;  %s506_s10 = smov %s508_s12 }
  0x28   :  { %11 = sbr.rel (!%p9_p5) target bundleno = 2 (0x2), region = 64 }

</bundles_post_ra>
